<compile_context>
chip_gen: v5e
topology: v5e:2x2
jax: 0.10.0
libtpu: 0.0.40
codegen_flags: <defaults>
</compile_context>

<pallas_src>
import jax
import jax.numpy as jnp
from jax.experimental import pallas as pl
from jax.experimental.pallas import tpu as pltpu


def _gather_target_kernel(pred_seq_ref, target_ref, picked_ref):
    """Accumulates pred_seq[row, target[row]] per row across vocab tiles."""
    j = pl.program_id(1)                       # vocab-tile index (innermost)
    tn, tv = pred_seq_ref.shape

    @pl.when(j == 0)
    def _init():
        picked_ref[...] = jnp.zeros_like(picked_ref)

    # Loop-invariant local column iota vs. per-row local target: one (tn,1)
    # subtraction, then one compare + one select per element, native dtype.
    col = jax.lax.broadcasted_iota(jnp.int32, (tn, tv), 1)
    local_tgt = target_ref[...] - j * tv                      # (tn, 1) int32
    zero = jnp.zeros((), dtype=pred_seq_ref.dtype)
    vals = jnp.where(col == local_tgt, pred_seq_ref[...], zero)
    # At most one column per row can match over the whole vocab, so the
    # native-dtype lane reduce is exact; cast only the (tn,1) result to f32.
    # Out-of-range / negative targets simply contribute 0 (torch.gather would
    # raise); an all-zero mask later gives inf/nan, matching the reference.
    picked_ref[...] += jnp.sum(vals, axis=1, keepdims=True).astype(jnp.float32)


def _choose_tiles(n, v, itemsize, row_tile=None, vocab_tile=None):
    """Pick (TN, TV). Last dims must be multiples of (8, 128) or full extents."""
    if vocab_tile is None:
        vocab_tile = v if v <= 4096 else 4096          # full dim or mult of 128
    if row_tile is None:
        budget = 8 * 1024 * 1024                       # per pred_seq buffer
        rt = budget // max(1, vocab_tile * itemsize)
        rt = max(8, min(512, (rt // 8) * 8))           # multiple of 8
        row_tile = n if n <= rt else rt
    return row_tile, vocab_tile


def language_model_criterion(pred_seq, pred_attr, target, mask, attr,
                             attr_weight=0.01, row_tile=None, vocab_tile=None):
    """pred_seq: (B, T, V) log-probs (native dtype, bf16 OK); pred_attr: (B, A);
    target: (B, T'>=T) int; mask: (B, T'>=T) float; attr: (B, A).
    Returns scalar loss (float32)."""
    B, T, V = pred_seq.shape
    N = B * T

    # Glue (truncate + flatten) stays in plain JAX; pred_seq keeps its native
    # dtype so only native-width bytes cross HBM.
    target2d = target[:, :T].astype(jnp.int32).reshape(N, 1)
    mask2d = mask[:, :T].astype(jnp.float32).reshape(N, 1)
    pred2d = pred_seq.reshape(N, V)

    tn, tv = _choose_tiles(N, V, pred2d.dtype.itemsize, row_tile, vocab_tile)
    grid = (pl.cdiv(N, tn), pl.cdiv(V, tv))

    # Size VMEM from actual need: double-buffered pred_seq tile + headroom for
    # the tiny target / output buffers and internal scratch.
    vmem_limit = int(2 * tn * tv * pred2d.dtype.itemsize + (8 << 20))

    picked = pl.pallas_call(
        _gather_target_kernel,
        out_shape=jax.ShapeDtypeStruct((N, 1), jnp.float32),
        grid_spec=pltpu.PrefetchScalarGridSpec(
            num_scalar_prefetch=0,
            grid=grid,
            in_specs=[
                pl.BlockSpec((tn, tv), lambda i, j: (i, j)),   # pred_seq tile
                pl.BlockSpec((tn, 1), lambda i, j: (i, 0)),    # target (resident over j)
            ],
            out_specs=pl.BlockSpec((tn, 1), lambda i, j: (i, 0)),
        ),
        compiler_params=pltpu.CompilerParams(
            dimension_semantics=("parallel", "arbitrary"),
            vmem_limit_bytes=vmem_limit),
    )(pred2d, target2d)

    # Tiny finishing ops stay in plain JAX (per perf review): masking, the two
    # scalar sums, the divide (NO guard -> inf/nan for an all-zero mask, exactly
    # matching the PyTorch reference), and the (B, A) attr L2 term.
    seq_loss = jnp.sum(-picked * mask2d) / jnp.sum(mask2d)
    diff = pred_attr.astype(jnp.float32) - attr.astype(jnp.float32)
    attr_loss = jnp.sqrt(jnp.sum(diff * diff)) / B
    return seq_loss + attr_weight * attr_loss


def _reference(pred_seq, pred_attr, target, mask, attr, attr_weight=0.01):
    B, T, V = pred_seq.shape
    target = target[:, :T].reshape(-1)
    mask = mask[:, :T].astype(jnp.float32).reshape(-1)
    logp = pred_seq.astype(jnp.float32).reshape(-1, V)
    picked = jnp.take_along_axis(logp, target[:, None].astype(jnp.int32),
                                 axis=1)[:, 0]
    seq_loss = jnp.sum(-picked * mask) / jnp.sum(mask)
    diff = pred_attr.astype(jnp.float32) - attr.astype(jnp.float32)
    attr_loss = jnp.sqrt(jnp.sum(diff * diff)) / B
    return seq_loss + attr_weight * attr_loss


if __name__ == "__main__":
    # Small shapes, chosen to exercise the tiled grid (ragged row and vocab
    # tails) as well as the single-block path and the bf16 fast path.
    B, T, V, A = 4, 20, 400, 16
    T_full = T + 3   # target/mask longer than pred_seq, as in the module

    key = jax.random.PRNGKey(0)
    k1, k2, k3, k4, k5 = jax.random.split(key, 5)

    logits = jax.random.normal(k1, (B, T, V), dtype=jnp.float32)
    pred_seq = jax.nn.log_softmax(logits, axis=-1)
    pred_attr = jax.random.normal(k2, (B, A), dtype=jnp.float32)
    target = jax.random.randint(k3, (B, T_full), 0, V, dtype=jnp.int32)
    mask = (jax.random.uniform(k4, (B, T_full)) > 0.3).astype(jnp.float32)
    attr = jax.random.normal(k5, (B, A), dtype=jnp.float32)

    ref = _reference(pred_seq, pred_attr, target, mask, attr, attr_weight=0.01)

    # 1) tiled path: grid = (3, 4), ragged last row tile (80 % 32) and ragged
    #    last vocab tile (400 % 128).
    out_tiled = language_model_criterion(pred_seq, pred_attr, target, mask,
                                         attr, attr_weight=0.01,
                                         row_tile=32, vocab_tile=128)
    out_tiled = jax.block_until_ready(out_tiled)
    assert jnp.allclose(out_tiled, ref, rtol=1e-4, atol=1e-5), (out_tiled, ref)

    # 2) default (auto-sized) tiles: whole problem fits one block here.
    out_auto = language_model_criterion(pred_seq, pred_attr, target, mask,
                                        attr, attr_weight=0.01)
    out_auto = jax.block_until_ready(out_auto)
    assert jnp.allclose(out_auto, ref, rtol=1e-4, atol=1e-5), (out_auto, ref)

    # 3) bf16 pred_seq: the gather picks the identical bf16 value the f32
    #    reference-on-bf16-input would, so results match to f32 precision.
    pred_seq_bf16 = pred_seq.astype(jnp.bfloat16)
    ref_bf16 = _reference(pred_seq_bf16, pred_attr, target, mask, attr,
                          attr_weight=0.01)
    out_bf16 = language_model_criterion(pred_seq_bf16, pred_attr, target, mask,
                                        attr, attr_weight=0.01,
                                        row_tile=32, vocab_tile=128)
    out_bf16 = jax.block_until_ready(out_bf16)
    assert jnp.allclose(out_bf16, ref_bf16, rtol=1e-4, atol=1e-5), (out_bf16,
                                                                    ref_bf16)

    print("KERNEL_OK")
</pallas_src>

<mosaic_0001>
module attributes {stable_mosaic.version = 11 : i64} {
  func.func @_gather_target_kernel(%arg0: i32, %arg1: i32, %arg2: memref<32x128xf32, #tpu.memory_space<vmem>>, %arg3: memref<32x1xi32, #tpu.memory_space<vmem>>, %arg4: memref<32x1xf32, #tpu.memory_space<vmem>>) attributes {dimension_semantics = [#tpu.dimension_semantics<parallel>, #tpu.dimension_semantics<arbitrary>], iteration_bounds = array<i64: 3, 4>, scalar_prefetch = 0 : i64, scratch_operands = 0 : i64, tpu.core_type = #tpu.core_type<tc>, window_params = [{transform_indices = @transform_0, window_bounds = array<i64: 32, 128>}, {transform_indices = @transform_1, window_bounds = array<i64: 32, 1>}, {transform_indices = @transform_2, window_bounds = array<i64: 32, 1>}]} {
    %c0_i32 = arith.constant 0 : i32
    %0 = arith.cmpi eq, %arg1, %c0_i32 : i32
    %1 = arith.extui %0 : i1 to i32
    %c0_i32_0 = arith.constant 0 : i32
    %2 = arith.cmpi ne, %1, %c0_i32_0 : i32
    scf.if %2 {
      %cst_9 = arith.constant 0.000000e+00 : f32
      %18 = vector.broadcast %cst_9 : f32 to vector<32x1xf32>
      %c0_10 = arith.constant 0 : index
      %c0_11 = arith.constant 0 : index
      %19 = vector.load %arg4[%c0_10, %c0_11] : memref<32x1xf32, #tpu.memory_space<vmem>>, vector<32x1xf32>
      tpu.vector_store %arg4[%c0_10, %c0_11], %18 {strides = array<i32>} : memref<32x1xf32, #tpu.memory_space<vmem>>, vector<32x1xf32>,
    } else {
    }
    %3 = tpu.iota {dimensions = array<i32: 1>} : vector<32x128xi32>
    %c0 = arith.constant 0 : index
    %c0_1 = arith.constant 0 : index
    %4 = vector.load %arg3[%c0, %c0_1] : memref<32x1xi32, #tpu.memory_space<vmem>>, vector<32x1xi32>
    %c128_i32 = arith.constant 128 : i32
    %5 = arith.muli %arg1, %c128_i32 : i32
    %6 = vector.broadcast %5 : i32 to vector<32x1xi32>
    %7 = arith.subi %4, %6 : vector<32x1xi32>
    %8 = vector.broadcast %7 : vector<32x1xi32> to vector<32x128xi32>
    %9 = arith.cmpi eq, %3, %8 : vector<32x128xi32>
    %c0_2 = arith.constant 0 : index
    %c0_3 = arith.constant 0 : index
    %10 = vector.load %arg2[%c0_2, %c0_3] : memref<32x128xf32, #tpu.memory_space<vmem>>, vector<32x128xf32>
    %cst = arith.constant 0.000000e+00 : f32
    %11 = vector.broadcast %cst : f32 to vector<32x128xf32>
    %12 = arith.select %9, %10, %11 : vector<32x128xi1>, vector<32x128xf32>
    %c0_4 = arith.constant 0 : index
    %c0_5 = arith.constant 0 : index
    %13 = vector.load %arg4[%c0_4, %c0_5] : memref<32x1xf32, #tpu.memory_space<vmem>>, vector<32x1xf32>
    %cst_6 = arith.constant dense<0.000000e+00> : vector<32xf32>
    %14 = vector.multi_reduction <add>, %12, %cst_6 [1] : vector<32x128xf32> to vector<32xf32>
    %15 = vector.shape_cast %14 : vector<32xf32> to vector<32x1xf32>
    %16 = arith.addf %13, %15 : vector<32x1xf32>
    %c0_7 = arith.constant 0 : index
    %c0_8 = arith.constant 0 : index
    %17 = vector.load %arg4[%c0_7, %c0_8] : memref<32x1xf32, #tpu.memory_space<vmem>>, vector<32x1xf32>
    tpu.vector_store %arg4[%c0_7, %c0_8], %16 {strides = array<i32>} : memref<32x1xf32, #tpu.memory_space<vmem>>, vector<32x1xf32>,
    return
  }
  func.func @transform_0(%arg0: i32, %arg1: i32) -> (i32, i32) {
    %c0_i32 = arith.constant 0 : i32
    return %arg0, %arg1 : i32, i32
  }
  func.func @transform_1(%arg0: i32, %arg1: i32) -> (i32, i32) {
    %c0_i32 = arith.constant 0 : i32
    %c0_i32_0 = arith.constant 0 : i32
    return %arg0, %c0_i32 : i32, i32
  }
  func.func @transform_2(%arg0: i32, %arg1: i32) -> (i32, i32) {
    %c0_i32 = arith.constant 0 : i32
    %c0_i32_0 = arith.constant 0 : i32
    return %arg0, %c0_i32 : i32, i32
  }
}

</mosaic_0001>

<bundles_post_ra>
// kernel: tpu_custom_call.1
= control target key start
LH: loop header
LB: loop body
LE: loop exit
PB: predicated region body
PF: predicated region fallthrough
CT: control target
= control target key end

     0   :  { %7 = vsyncpa [#allocation3], 0  ;;  %s1191_s0 = inlined_call_operand.hbm [shape: f32[80,400], index: 0, kind: input, shape index: {}]   ;;  %s1192_s1 = inlined_call_operand.vmem [shape: s32[80,1], index: 1, kind: input, shape index: {}]   ;;  %s1193_s2 = inlined_call_operand.vmem [shape: f32[80,1], index: 2, kind: output, shape index: {}]  }
   0x1   :  { %9 = vsyncpa [#allocation3 + $0x1], 0  ;;  %s965_s9 = smov 0   ;;  %s967_s10 = smov 0  }
   0x2   :  { %s969_s11 = smov 0   ;;  %s971_s12 = smov 0  }
   0x3   :  { %s973_s13 = smov 0   ;;  %s975_s14 = smov 0  }
   0x4   :  { %s977_s15 = smov 0   ;;  %s979_s16 = smov 0  }
   0x5   :  { %s981_s17 = smov 0   ;;  %s983_s18 = smov 0  }
   0x6 LB: > { %1197 = sst [smem:[#allocation6_spill]] %s906_s17  ;;  %s565_s19 = sadd.s32 4294967295, %s910_s18   ;;  %s910_s18 = sphi %s983_s18, %s15_s18   ;;  %s906_s17 = sphi %s981_s17, %s1211_s17   ;;  %s902_s16 = sphi %s979_s16, %s1218_s16   ;;  %s898_s15 = sphi %s977_s15, %s1209_s15   ;;  %s894_s14 = sphi %s975_s14, %s1217_s14   ;;  %s890_s13 = sphi %s973_s13, %s1216_s13   ;;  %s886_s12 = sphi %s971_s12, %s1215_s12   ;;  %s882_s11 = sphi %s969_s11, %s1214_s11   ;;  %s878_s10 = sphi %s967_s10, %s1213_s10   ;;  %s874_s9 = sphi %s965_s9, %s1212_s9  }
   0x7   : > { %s24_s20 = sadd.s32 1, %s902_s16  ;;  %s27_s21 = sadd.s32 1, %s906_s17 }
   0x8   : > { %p25_p0 = scmp.ge.s32.totalorder %s24_s20, 4  ;;  %s36_s22 = sadd.s32 1, %s890_s13 }
   0x9   : > { %p43_p1 = scmp.ne.s32.totalorder %s890_s13, %s886_s12  ;;  %p44_p2 = scmp.eq.s32.totalorder %s910_s18, 0 }
   0xa   : > { %s1220_s20 = smov (%p25_p0, %s24_s20), 0  ;;  %s1222_s21 = smov (!%p25_p0, %s27_s21), %s906_s17 }
   0xb   : > { %1198 = sst [smem:[#allocation7_spill]] %s1220_s20  ;;  %s32_s23 = ssub.s32 %s902_s16, %s1220_s20 }
   0xc   : > { %p29_p3 = scmp.ge.s32.totalorder %s1222_s21, 3  ;;  %p49_p4 = scmp.ne.s32.totalorder %s886_s12, %s882_s11 }
   0xd   : > { %p1026_p5 = por %p44_p2, %p43_p1  ;;  %p50_p6 = scmp.eq.s32.totalorder %s565_s19, 0 }
   0xe   : > { %s1224_s21 = smov (%p29_p3, %s1222_s21), 0  ;;  %s88_s26 = sadd.s32 1, %s878_s10 }
   0xf   : > { %1200 = sst [smem:[#allocation8_spill]] %s1224_s21  ;;  %p1032_p7 = por %p50_p6, %p49_p4 }
  0x10   : > { %s31_s27 = ssub.s32 %s906_s17, %s1224_s21  ;;  %p98_p8 = scmp.ne.s32.totalorder %s878_s10, %s874_s9 }
  0x11   : > { %s33_s28 = sor.u32 %s32_s23, %s31_s27  ;;  %p86_p9 = scmp.eq.s32.totalorder %s31_s27, 0 }
  0x12   : > { %p34_p10 = scmp.eq.s32.totalorder %s33_s28, 0  ;;  %p99_p11 = scmp.eq.s32.totalorder %s565_s19, 11 }
  0x13   : > { %s1042_s29 = scalar_select %p86_p9, %s878_s10, %s88_s26  }
  0x14   : > { %s1045_s30 = scalar_select %p34_p10, %s890_s13, %s36_s22  }
  0x15   : > { %p1047_p12 = por %p99_p11, %p98_p8  ;;  %p568_p13 = scmp.ge.s32.totalorder %s910_s18, 12 }
  0x16   : > { %1202 = sst [smem:[#allocation9_spill]] %s1045_s30 }
  0x17   : > { %121 = sbr.rel (%p568_p13) target bundleno = 55 (0x37), region = 16 }
  0x1c   : > { %124 = sbr.rel (!%p1026_p5) target bundleno = 55 (0x37), region = 20  ;;  %s125_s4 = sand.u32 (%p1026_p5), 1, %s890_s13  }
  0x1d   : > { %s570_s5 = sshll.u32 (%p1026_p5), %s906_s17, 2  ;;  %s569_s6 = sshll.u32 (%p1026_p5), %s125_s4, 5 }
  0x1e   : > { %s131_s7 = ssub.s32 (%p1026_p5), 10, %s570_s5  ;;  %s1059_s22 = scalar_lea.sflag (%p1026_p5), [#allocation3], %s125_s4 }
  0x1f   : > { %p132_p0 = scmp.lt.s32.totalorder (%p1026_p5), %s131_s7, 4  ;;  %s129_s23 = scalar_lea.vmem (%p1026_p5), [#allocation2], %s569_s6 }
  0x21   : > { %s1226_s7 = smov (!%p132_p0, %s131_s7), 4 }
  0x22   : > { %s571_s8 = sshll.u32 %s1226_s7, 3 }
  0x23   : > { %s135_s11 = ssub.s32 32, %s571_s8 }
  0x24   : > { %s136_s19 = sshll.u32 %s135_s11, 4 }
  0x25   : > { %137 = vsyncadd %s1059_s22, %s136_s19  ;;  %p1062_p1 = scmp.ne.s32.totalorder %s571_s8, 0  ;;  %s601_s26 = sshll.u32 %s906_s17, 4 }
  0x26   : > { %s140_s27 = sadd.s32 %s902_s16, %s601_s26  ;;  %s146_s28 = sshll.u32 %s129_s23, 4  ;;  %s147_s28 = int_to_ptr.vmem [resolvable:$true] %s146_s28 }
  0x27   : > { %s574_s5 = sshll.u32 %s140_s27, 3  ;;  %s576_s20 = sshll.u32 %s1226_s7, 7 }
  0x28   : > { %s142_s4 = scalar_lea.hbm %s1191_s0, %s574_s5  ;;  %s759_s19 = sshrl.u32 %s576_s20, 4 }
  0x29   : > { %s144_s6 = sshll.u32 %s142_s4, 4  ;;  %s776_s30 = sshra.s32 %s147_s28, 4  ;;  %s145_s6 = int_to_ptr.hbm [resolvable:$true] %s144_s6  ;;  %s777_s30 = int_to_ptr.vmem [resolvable:$true] %s776_s30 }
  0x2a   : > { %s783_s8 = scalar_lea.vmem %s777_s30, %s759_s19  ;;  %s944_s17 = smov [#allocation2]  }
  0x2b   : > { %p784_p2 = scmp.ne.s32.totalorder %s777_s30, %s783_s8  ;;  %s787_s26 = scalar_lea.vmem %s944_s17, 64 }
  0x2c   : > { %p789_p5 = scmp.lt.s32.totalorder %s787_s26, %s783_s8 }
  0x2d   : > { %p785_p3 = pnand %p784_p2, %p1062_p1 }
  0x2f   : > { %p786_p4 = pneg %p785_p3 }
  0x31   : > { %p791_p6 = pnand %p789_p5, %p786_p4 }
  0x33   : > { %794 = shalt.err (!%p791_p6)
}
  0x34   : > { %s945_s23 = smov 512   ;;  %s946_s21 = smov 128  }
  0x35   : > { %s947_s7 = smov 8  }
  0x36   : > { %152 = dma.hbm_to_vmem [thread:$0]  (%p1062_p1), %s145_s6, %s576_s20, %s147_s28, %s1059_s22, %s945_s23, %s946_s21, %s947_s7  }
  0x37 PF: > { %p577_p8 = scmp.ge.s32.totalorder %s910_s18, 1  ;;  %p171_p9 = scmp.lt.s32.totalorder %s910_s18, 13 }
  0x39   : > { %p172_p10 = pnand %p577_p8, %p171_p9 }
  0x3a   : > { %s177_s17 = sand.u32 (!%p172_p10), 1, %s886_s12  }
  0x3b   : > { %175 = sbr.rel (%p172_p10) target bundleno = 367 (0x16f), region = 28  ;;  %s578_s30 = sshll.u32 (!%p172_p10), %s177_s17, 5 }
  0x3c   : > { %s178_s27 = scalar_lea.sflag (!%p172_p10), [#allocation3], %s177_s17  ;;  %s1080_s5 = scalar_lea.vmem (!%p172_p10), [#allocation2], %s578_s30 }
  0x40   : > { %869 = dma.done.wait (%p1032_p7), %s178_s27, 512  }
  0x41   : > { %871 = vsyncadd (%p1032_p7), %s178_s27, 4294966784  ;;  %s208_s20 = sand.u32 1, %s874_s9   ;;  %s1088_s22 = sshll.u32 %s898_s15, 2 }
  0x42   : > { %s579_s24 = sshll.u32 %s208_s20, 5  ;;  %p221_p11 = scmp.lt.s32.totalorder %s1088_s22, 9 }
  0x43   : > { %s1095_s8 = scalar_lea.vmem [#allocation4], %s579_s24   ;;  %p582_p13 = scmp.ne.s32.totalorder %s894_s14, 0 }
  0x44   : > { %s222_s28 = scalar_select %p221_p11, %s1088_s22, 9 }
  0x45   : > { %238 = sbr.rel (%p582_p13) target bundleno = 79 (0x4f), region = 36 }
  0x46   : > { %s581_s11 = sshll.u32 %s222_s28, 3 }
  0x47   : > { %s224_s19 = scalar_lea.vmem %s1192_s1, %s581_s11 }
  0x4a   : > { %vm239_vm0 = vcmask 7168   ;;  %v948_v0 = vmov 0.0  }
  0x4b   : > { %240 = vst.msk [vmem:[%s1095_s8] sm:$0xff] %vm239_vm0, %v948_v0 }
  0x4c   : > { %241 = vst.msk [vmem:[%s1095_s8 + $0x8] sm:$0xff] %vm239_vm0, %v948_v0 }
  0x4d   : > { %242 = vst.msk [vmem:[%s1095_s8 + $0x10] sm:$0xff] %vm239_vm0, %v948_v0 }
  0x4e   : > { %243 = vst.msk [vmem:[%s1095_s8 + $0x18] sm:$0xff] %vm239_vm0, %v948_v0 }
  0x4f PF: > { %v248_v1 = vld [vmem:[%s224_s19 + $0x10] sm:$0xff]  ;;  %s583_s9 = sshll.u32 %s894_s14, 7  ;;  %v246_v2 = vld [vmem:[%s224_s19] sm:$0xff]  ;;  %v949_v3 = vmov 0   ;;  %v249_v7 = vld [vmem:[%s224_s19 + $0x18] sm:$0xff]  ;;  %v244_v11 = vlaneseq  ;;  %vm296_vm5 = vcmask 7168  }
  0x50   : > { %756 = vset.pattern.permute.xlu1 %v949_v3  ;;  %755 = vset.pattern.permute.xlu0 %v949_v3  ;;  %v251_v4 = vstv %s583_s9  ;;  %v247_v8 = vld [vmem:[%s224_s19 + $0x8] sm:$0xff]  ;;  %v274_v13 = vld [vmem:[%s1080_s5 + $0x10] sm:$0xff]  ;;  %v272_v14 = vld [vmem:[%s1080_s5] sm:$0xff]  ;;  %s309_s14 = ssub.s32 (%p1047_p12), 10, %s1088_s22  ;;  %s602_s25 = sshll.u32 (%p1047_p12), %s898_s15, 5 }
  0x51   : > { %v254_v5 = vsub.s32 %v248_v1, %v251_v4  ;;  %v252_v6 = vsub.s32 %v246_v2, %v251_v4  ;;  %v255_v9 = vsub.s32 %v249_v7, %v251_v4  ;;  %v253_v10 = vsub.s32 %v247_v8, %v251_v4  ;;  %v275_v19 = vld [vmem:[%s1080_s5 + $0x18] sm:$0xff]  ;;  %v273_v20 = vld [vmem:[%s1080_s5 + $0x8] sm:$0xff]  ;;  %p310_p7 = scmp.lt.s32.totalorder (%p1047_p12), %s309_s14, 4  ;;  %s1122_s21 = scalar_lea.vmem (%p1047_p12), %s1193_s2, %s602_s25  }
  0x52   : > { %v245_v12 = vand.u32 127, %v244_v11  ;;  %v280_v26 = vld [vmem:[%s1095_s8] sm:$0xff] }
  0x53   : > { %263 = vperm.xlu1 %756, %v254_v5   ;;  %257 = vperm.xlu0 %755, %v252_v6   ;;  %v281_v32 = vld [vmem:[%s1095_s8 + $0x8] sm:$0xff] }
  0x54   : > { %v282_v25 = vld [vmem:[%s1095_s8 + $0x10] sm:$0xff] }
  0x55   : > { %v283_v31 = vld [vmem:[%s1095_s8 + $0x18] sm:$0xff] }
  0x5b   : > { %266 = vperm.xlu1 %756, %v255_v9   ;;  %260 = vperm.xlu0 %755, %v253_v10  }
  0xc5   : > { %v264_v15 = vpop.permute.xlu1 %263  ;;  %v258_v16 = vpop.permute.xlu0 %257 }
  0xc6   : > { %vm270_vm1 = vcmp.eq.s32.totalorder %v245_v12, %v264_v15  ;;  %vm268_vm2 = vcmp.eq.s32.totalorder %v245_v12, %v258_v16 }
  0xc7   : > { %v278_v17 = vsel %vm270_vm1, %v274_v13, 0.0  ;;  %v276_v18 = vsel %vm268_vm2, %v272_v14, 0.0 }
  0xc8   : > { %288 = vadd.xlane.f32.xlu0 %v278_v17  ;;  %284 = vadd.xlane.f32.xlu2 %v276_v18 }
  0xcd   : > { %v267_v21 = vpop.permute.xlu1 %266  ;;  %v261_v22 = vpop.permute.xlu0 %260 }
  0xce   : > { %vm271_vm3 = vcmp.eq.s32.totalorder %v245_v12, %v267_v21  ;;  %vm269_vm4 = vcmp.eq.s32.totalorder %v245_v12, %v261_v22 }
  0xcf   : > { %v279_v23 = vsel %vm271_vm3, %v275_v19, 0.0  ;;  %v277_v24 = vsel %vm269_vm4, %v273_v20, 0.0 }
  0xd0   : > { %290 = vadd.xlane.f32.xlu1 %v279_v23  ;;  %286 = vadd.xlane.f32.xlu2 %v277_v24 }
 0x13b   : > { %v289_v27 = vpop.xlane.xlu0 %288  ;;  %v285_v28 = vpop.xlane.xlu2 %284 }
 0x13c   : > { %v294_v29 = vadd.f32 %v289_v27, %v282_v25  ;;  %v292_v30 = vadd.f32 %v285_v28, %v280_v26 }
 0x13e   : > { %299 = vst.msk [vmem:[%s1095_s8 + $0x10] sm:$0xff] %vm296_vm5, %v294_v29 }
 0x13f   : > { %297 = vst.msk [vmem:[%s1095_s8] sm:$0xff] %vm296_vm5, %v292_v30 }
 0x143   : > { %v291_v33 = vpop.xlane.xlu1 %290  ;;  %v287_v34 = vpop.xlane.xlu2 %286  ;;  %307 = sbr.rel (!%p1047_p12) target bundleno = 367 (0x16f), region = 40 }
 0x144   : > { %v295_v35 = vadd.f32 %v291_v33, %v283_v31  ;;  %v293_v36 = vadd.f32 %v287_v34, %v281_v32 }
 0x146   : > { %300 = vst.msk [vmem:[%s1095_s8 + $0x18] sm:$0xff] %vm296_vm5, %v295_v35 }
 0x147   : > { %298 = vst.msk [vmem:[%s1095_s8 + $0x8] sm:$0xff] %vm296_vm5, %v293_v36 }
 0x148   : > { %s1228_s14 = smov (!%p310_p7, %s309_s14), 4 }
 0x149   : > { %s586_s7 = sshll.u32 %s1228_s14, 3 }
 0x14a   : > { %p589_p0 = scmp.eq.s32.totalorder %s586_s7, 0 }
 0x14b   : > { %s1128_s17 = sshrl.u32 (!%p589_p0), %s1228_s14, 2 }
 0x14c   : > { %318 = sbr.rel (%p589_p0) target bundleno = 367 (0x16f), region = 44  ;;  %p590_p12 = scmp.le.s32.totalorder (!%p589_p0), %s1128_s17, 0 }
 0x151   : > { %501 = sbr.rel (%p590_p12) target bundleno = 350 (0x15e), region = 129  ;;  %s1205_s15 = smov (!%p590_p12), %s1122_s21 }
 0x152   : > { %s1206_s3 = smov (!%p590_p12), %s1095_s8  ;;  %s1137_s30 = smov (!%p590_p12), 0  }
 0x153   : > { %s924_s27 = smov (!%p590_p12), 0  }
 0x156 LB: >> { %v387_v37 = vld [vmem:[%s918_s3] sm:$0xff]  ;;  %v389_v38 = vld [vmem:[%s918_s3 + $0x8] sm:$0xff]  ;;  %v391_v39 = vld [vmem:[%s918_s3 + $0x10] sm:$0xff]  ;;  %s395_s5 = sadd.s32 1, %s922_s30  ;;  %s381_s27 = sadd.s32 1, %s926_s27   ;;  %s926_s27 = sphi %s924_s27, %s381_s27   ;;  %s922_s30 = sphi %s1137_s30, %s1207_s30   ;;  %s918_s3 = sphi %s1206_s3, %s400_s3   ;;  %s914_s15 = sphi %s1205_s15, %s401_s15  }
 0x157   : >> { %388 = vst [vmem:[%s914_s15] sm:$0xff] %v387_v37  ;;  %v393_v40 = vld [vmem:[%s918_s3 + $0x18] sm:$0xff]  ;;  %p396_p1 = scmp.ge.s32.totalorder %s395_s5, %s1128_s17  ;;  %p380_p2 = scmp.ge.s32.totalorder %s381_s27, %s1128_s17 }
 0x158   : >> { %390 = vst [vmem:[%s914_s15 + $0x8] sm:$0xff] %v389_v38 }
 0x159   : >> { %392 = vst [vmem:[%s914_s15 + $0x10] sm:$0xff] %v391_v39  ;;  %s1230_s5 = smov (%p396_p1, %s395_s5), 0  ;;  %383 = sbr.rel (!%p380_p2) target bundleno = 342 (0x156), region = 135 }
 0x15a   : >> { %394 = vst [vmem:[%s914_s15 + $0x18] sm:$0xff] %v393_v40  ;;  %s591_s20 = sshll.u32 %s1230_s5, 5  ;;  %s1207_s30 = smov %s1230_s5 }
 0x15b   : >> { %s400_s3 = scalar_lea.vmem %s1095_s8, %s591_s20 [#allocation4]   ;;  %s401_s15 = scalar_lea.vmem %s1122_s21, %s591_s20  }
 0x15e PF: > { %s1153_s22 = sand.u32 3, %s1228_s14   ;;  %s603_s24 = sshll.u32 %s1128_s17, 5 }
 0x15f   : > { %s406_s28 = scalar_lea.vmem %s1095_s8, %s603_s24 [#allocation4]   ;;  %s408_s11 = scalar_lea.vmem %s1122_s21, %s603_s24  }
 0x160   : > { %p596_p3 = scmp.le.s32.totalorder %s1153_s22, 0 }
 0x161   : > { %s928_s4 = smov (!%p596_p3), %s408_s11   ;;  %s932_s6 = smov (!%p596_p3), %s406_s28  }
 0x162   : > { %515 = sbr.rel (%p596_p3) target bundleno = 367 (0x16f), region = 140  ;;  %s936_s19 = smov (!%p596_p3), 0  }
 0x163   : > { %s940_s9 = smov (!%p596_p3), 0  }
 0x167 LB: >> { %v418_v41 = vld [vmem:[%s934_s6] sm:$0xff]  ;;  %s420_s14 = sadd.s32 1, %s938_s19  ;;  %s412_s9 = sadd.s32 1, %s942_s9   ;;  %s942_s9 = sphi %s940_s9, %s412_s9   ;;  %s938_s19 = sphi %s936_s19, %s937_s19   ;;  %s934_s6 = sphi %s932_s6, %s425_s6   ;;  %s930_s4 = sphi %s928_s4, %s426_s4  }
 0x168   : >> { %419 = vst [vmem:[%s930_s4] sm:$0xff] %v418_v41  ;;  %p421_p4 = scmp.ge.s32.totalorder %s420_s14, %s1153_s22  ;;  %p411_p5 = scmp.ge.s32.totalorder %s412_s9, %s1153_s22 }
 0x16a   : >> { %s1232_s14 = smov (%p421_p4, %s420_s14), 0  ;;  %414 = sbr.rel (!%p411_p5) target bundleno = 359 (0x167), region = 146 }
 0x16b   : >> { %s597_s8 = sshll.u32 %s1232_s14, 3  ;;  %s937_s19 = smov %s1232_s14  }
 0x16c   : >> { %s425_s6 = scalar_lea.vmem %s406_s28, %s597_s8 [#allocation4]   ;;  %s426_s4 = scalar_lea.vmem %s408_s11, %s597_s8  }
 0x16f PF: > { %s15_s18 = sadd.s32 1, %s910_s18   ;;  %s1208_s25 = sld [smem:[#allocation9_spill]] }
 0x170   : > { %p12_p6 = scmp.ge.s32.totalorder %s15_s18, 14   ;;  %s1209_s15 = sld [smem:[#allocation6_spill]] }
 0x171   : > { %s1210_s26 = sld [smem:[#allocation7_spill]]  ;;  %s1212_s9 = smov %s878_s10 }
 0x172   : > { %s1211_s17 = sld [smem:[#allocation8_spill]]  ;;  %s1213_s10 = smov %s1042_s29 }
 0x173   : > { %s1214_s11 = smov %s886_s12  ;;  %s1215_s12 = smov %s890_s13 }
 0x174   : > { %s1217_s14 = smov %s902_s16  ;;  %14 = sbr.rel (!%p12_p6) target bundleno = 6 (0x6), region = 157 }
 0x175   : > { %s1216_s13 = smov %s1208_s25 }
 0x177   : > { %s1218_s16 = smov %s1210_s26 }
 0x179   :  { %442 = vsyncpa [#allocation3], 1 }
 0x17a   :  { %444 = vsyncpa [#allocation3 + $0x1], 1 }

</bundles_post_ra>
